<compile_context>
chip_gen: v6e
topology: v6e:2x2x1
jax: 0.10.0
libtpu: 0.0.40
codegen_flags: <defaults>
</compile_context>

<pallas_src>
import functools

import jax
import jax.numpy as jnp
from jax import lax
from jax.experimental import pallas as pl
from jax.experimental.pallas import tpu as pltpu

D_MODEL = 32
D_FF = 64
N_HEADS = 4
HEAD_DIM = D_MODEL // N_HEADS
EPS = 1e-5  # torch.nn.LayerNorm default


def _layernorm(x, gamma, beta):
    mu = jnp.mean(x, axis=-1, keepdims=True)
    xc = x - mu
    var = jnp.mean(xc * xc, axis=-1, keepdims=True)
    inv = lax.rsqrt(var + EPS)
    return xc * inv * gamma + beta


def decoder_layer_kernel(x_ref, w_ref, vec_ref, o_ref, *, B, T):
    BT, D = x_ref.shape

    x = x_ref[...]                                   # (BT, D)

    # --- single packed, 128-lane-aligned weight slab (static slices) ---
    wqkv = w_ref[:, 0:3 * D]                         # (D, 3D)  Q cols pre-scaled
    wo = w_ref[:, 3 * D:4 * D]                       # (D, D)
    w1 = w_ref[:, 4 * D:4 * D + D_FF]                # (D, D_FF)
    w2t = w_ref[:, 4 * D + D_FF:4 * D + 2 * D_FF]    # (D, D_FF) == w2^T

    bqkv = vec_ref[0:1, :]                           # (1, 3D)
    bo = vec_ref[1:2, 0:D]
    bf1 = vec_ref[2:3, 0:D_FF]
    bf2 = vec_ref[3:4, 0:D]
    g1 = vec_ref[4:5, 0:D]
    be1 = vec_ref[5:6, 0:D]
    g3 = vec_ref[6:7, 0:D]
    be3 = vec_ref[7:8, 0:D]

    # --- fused QKV projection: one wide MXU matmul ---
    qkv = jnp.dot(x, wqkv, preferred_element_type=jnp.float32) + bqkv
    q = qkv[:, 0:D].reshape(B, T, D)
    k = qkv[:, D:2 * D].reshape(B, T, D)
    v = qkv[:, 2 * D:3 * D].reshape(B, T, D)

    # Per-head, per-batch attention; the output projection is fused into the
    # head loop so each head's (BT, HEAD_DIM) result never touches VMEM.
    attn = None
    for h in range(N_HEADS):
        cs = slice(h * HEAD_DIM, (h + 1) * HEAD_DIM)
        qh, kh, vh = q[:, :, cs], k[:, :, cs], v[:, :, cs]      # (B, T, hd)
        s = lax.dot_general(qh, kh,
                            dimension_numbers=(((2,), (2,)), ((0,), (0,))),
                            preferred_element_type=jnp.float32)  # (B, T, T)
        s = s - jnp.max(s, axis=-1, keepdims=True)
        p = jnp.exp(s)
        p = p * pl.reciprocal(jnp.sum(p, axis=-1, keepdims=True), approx=True)
        oh = lax.dot_general(p, vh,
                             dimension_numbers=(((2,), (1,)), ((0,), (0,))),
                             preferred_element_type=jnp.float32)  # (B, T, hd)
        contrib = jnp.dot(oh.reshape(BT, HEAD_DIM), wo[cs, :],
                          preferred_element_type=jnp.float32)      # (BT, D)
        attn = contrib if attn is None else attn + contrib
    attn = attn + bo

    # residual + norm1 (dropout == identity in eval mode)
    x1 = _layernorm(x + attn, g1, be1)

    # feed-forward: Linear -> ReLU -> Linear (w2 applied via its transpose,
    # contracting last dims -> no in-kernel transpose)
    hid = jnp.maximum(
        jnp.dot(x1, w1, preferred_element_type=jnp.float32) + bf1, 0.0)
    ff = lax.dot_general(hid, w2t,
                         dimension_numbers=(((1,), (1,)), ((), ())),
                         preferred_element_type=jnp.float32) + bf2

    # residual + norm3
    out = _layernorm(x1 + ff, g3, be3)
    o_ref[...] = out.astype(o_ref.dtype)


def pack_params(params):
    """Init-time preprocessing: pack 16 tiny params into 2 slabs, fold attn scale."""
    (wq, bq, wk, bk, wv, bv, wo, bo, g1, be1, w1, bf1, w2, bf2, g3, be3) = params
    scale = jnp.float32(1.0 / (HEAD_DIM ** 0.5))

    # 128-lane-aligned: [wqkv(96) | wo(32)] fills lanes 0..127,
    #                   [w1(64)   | w2^T(64)] fills lanes 128..255  -> (32, 256)
    w_slab = jnp.concatenate([wq * scale, wk, wv, wo, w1, w2.T], axis=1)

    width = 3 * D_MODEL  # 96

    def row(*vs):
        v = jnp.concatenate([jnp.reshape(a, (-1,)) for a in vs])
        return jnp.pad(v, (0, width - v.shape[0]))

    # bias / LayerNorm slab, one param per row, left-aligned zero-padded -> (8, 96)
    vec_slab = jnp.stack([
        row(bq * scale, bk, bv),
        row(bo), row(bf1), row(bf2),
        row(g1), row(be1), row(g3), row(be3),
    ])
    return w_slab, vec_slab


def autoformer_decoder_layer(x, packed):
    w_slab, vec_slab = packed
    B, T, D = x.shape
    assert D == D_MODEL

    x2d = x.reshape(B * T, D)                      # reshape in the wrapper, not in-kernel
    vmem = lambda: pl.BlockSpec(memory_space=pltpu.MemorySpace.VMEM)
    out2d = pl.pallas_call(
        functools.partial(decoder_layer_kernel, B=B, T=T),
        out_shape=jax.ShapeDtypeStruct((B * T, D), x.dtype),
        in_specs=[vmem(), vmem(), vmem()],
        out_specs=vmem(),
    )(x2d, w_slab, vec_slab)
    return out2d.reshape(B, T, D)


def reference(x, params):
    (wq, bq, wk, bk, wv, bv, wo, bo, g1, be1, w1, bf1, w2, bf2, g3, be3) = params
    B, T, D = x.shape

    def ln(y, g, b):
        mu = y.mean(-1, keepdims=True)
        var = ((y - mu) ** 2).mean(-1, keepdims=True)
        return (y - mu) / jnp.sqrt(var + EPS) * g + b

    q = x @ wq + bq
    k = x @ wk + bk
    v = x @ wv + bv
    qh = q.reshape(B, T, N_HEADS, HEAD_DIM).transpose(0, 2, 1, 3)
    kh = k.reshape(B, T, N_HEADS, HEAD_DIM).transpose(0, 2, 1, 3)
    vh = v.reshape(B, T, N_HEADS, HEAD_DIM).transpose(0, 2, 1, 3)
    s = jnp.einsum('bhtd,bhTd->bhtT', qh, kh) / (HEAD_DIM ** 0.5)
    p = jax.nn.softmax(s, axis=-1)
    o = jnp.einsum('bhtT,bhTd->bhtd', p, vh).transpose(0, 2, 1, 3).reshape(B, T, D)
    attn = o @ wo + bo
    x1 = ln(x + attn, g1, be1)
    ff = jax.nn.relu(x1 @ w1 + bf1) @ w2 + bf2
    return ln(x1 + ff, g3, be3)


def make_params(key):
    ks = jax.random.split(key, 10)

    def linear(kw, kb, fan_in, fan_out):
        lim = 1.0 / (fan_in ** 0.5)
        w = jax.random.uniform(kw, (fan_in, fan_out), jnp.float32, -lim, lim)
        b = jax.random.uniform(kb, (1, fan_out), jnp.float32, -lim, lim)
        return w, b

    wq, bq = linear(ks[0], ks[1], D_MODEL, D_MODEL)
    wk, bk = linear(ks[2], ks[3], D_MODEL, D_MODEL)
    wv, bv = linear(ks[4], ks[5], D_MODEL, D_MODEL)
    wo, bo = linear(ks[6], ks[7], D_MODEL, D_MODEL)
    w1, bf1 = linear(ks[8], ks[9], D_MODEL, D_FF)
    kw2, kb2 = jax.random.split(jax.random.fold_in(key, 123))
    w2, bf2 = linear(kw2, kb2, D_FF, D_MODEL)
    g1 = jnp.ones((1, D_MODEL), jnp.float32)
    be1 = jnp.zeros((1, D_MODEL), jnp.float32)
    g3 = jnp.ones((1, D_MODEL), jnp.float32)
    be3 = jnp.zeros((1, D_MODEL), jnp.float32)
    return (wq, bq, wk, bk, wv, bv, wo, bo, g1, be1, w1, bf1, w2, bf2, g3, be3)


if __name__ == "__main__":
    key = jax.random.PRNGKey(0)
    pkey, xkey = jax.random.split(key)
    params = make_params(pkey)
    packed = pack_params(params)

    B, T = 2, 8
    x = jax.random.normal(xkey, (B, T, D_MODEL), jnp.float32)

    out = autoformer_decoder_layer(x, packed)
    out = jax.block_until_ready(out)

    ref = reference(x, params)
    assert out.shape == (B, T, D_MODEL)
    # Tolerance 2e-3: softmax denominator uses the EUP approx reciprocal
    # (pl.reciprocal(approx=True)), which carries ~1e-4-level relative error.
    err = jnp.max(jnp.abs(out - ref))
    assert jnp.allclose(out, ref, atol=2e-3, rtol=2e-3), f"max abs err {err}"
    print("KERNEL_OK")
</pallas_src>

<mosaic_0001>
module attributes {stable_mosaic.version = 11 : i64} {
  func.func @decoder_layer_kernel(%arg0: memref<16x32xf32, #tpu.memory_space<vmem>>, %arg1: memref<32x256xf32, #tpu.memory_space<vmem>>, %arg2: memref<8x96xf32, #tpu.memory_space<vmem>>, %arg3: memref<16x32xf32, #tpu.memory_space<vmem>>) attributes {dimension_semantics = [], scalar_prefetch = 0 : i64, scratch_operands = 0 : i64, tpu.core_type = #tpu.core_type<tc>} {
    %c0 = arith.constant 0 : index
    %c0_0 = arith.constant 0 : index
    %0 = vector.load %arg0[%c0, %c0_0] : memref<16x32xf32, #tpu.memory_space<vmem>>, vector<16x32xf32>
    %c0_1 = arith.constant 0 : index
    %c0_2 = arith.constant 0 : index
    %1 = vector.load %arg1[%c0_1, %c0_2] : memref<32x256xf32, #tpu.memory_space<vmem>>, vector<32x96xf32>
    %c0_3 = arith.constant 0 : index
    %c96 = arith.constant 96 : index
    %2 = vector.load %arg1[%c0_3, %c96] : memref<32x256xf32, #tpu.memory_space<vmem>>, vector<32x32xf32>
    %c0_4 = arith.constant 0 : index
    %c128 = arith.constant 128 : index
    %3 = vector.load %arg1[%c0_4, %c128] : memref<32x256xf32, #tpu.memory_space<vmem>>, vector<32x64xf32>
    %c0_5 = arith.constant 0 : index
    %c192 = arith.constant 192 : index
    %4 = vector.load %arg1[%c0_5, %c192] : memref<32x256xf32, #tpu.memory_space<vmem>>, vector<32x64xf32>
    %c0_6 = arith.constant 0 : index
    %c0_7 = arith.constant 0 : index
    %5 = vector.load %arg2[%c0_6, %c0_7] : memref<8x96xf32, #tpu.memory_space<vmem>>, vector<1x96xf32>
    %c1 = arith.constant 1 : index
    %c0_8 = arith.constant 0 : index
    %6 = vector.load %arg2[%c1, %c0_8] : memref<8x96xf32, #tpu.memory_space<vmem>>, vector<1x32xf32>
    %c2 = arith.constant 2 : index
    %c0_9 = arith.constant 0 : index
    %7 = vector.load %arg2[%c2, %c0_9] : memref<8x96xf32, #tpu.memory_space<vmem>>, vector<1x64xf32>
    %c3 = arith.constant 3 : index
    %c0_10 = arith.constant 0 : index
    %8 = vector.load %arg2[%c3, %c0_10] : memref<8x96xf32, #tpu.memory_space<vmem>>, vector<1x32xf32>
    %c4 = arith.constant 4 : index
    %c0_11 = arith.constant 0 : index
    %9 = vector.load %arg2[%c4, %c0_11] : memref<8x96xf32, #tpu.memory_space<vmem>>, vector<1x32xf32>
    %c5 = arith.constant 5 : index
    %c0_12 = arith.constant 0 : index
    %10 = vector.load %arg2[%c5, %c0_12] : memref<8x96xf32, #tpu.memory_space<vmem>>, vector<1x32xf32>
    %c6 = arith.constant 6 : index
    %c0_13 = arith.constant 0 : index
    %11 = vector.load %arg2[%c6, %c0_13] : memref<8x96xf32, #tpu.memory_space<vmem>>, vector<1x32xf32>
    %c7 = arith.constant 7 : index
    %c0_14 = arith.constant 0 : index
    %12 = vector.load %arg2[%c7, %c0_14] : memref<8x96xf32, #tpu.memory_space<vmem>>, vector<1x32xf32>
    %cst = arith.constant dense<0.000000e+00> : vector<16x96xf32>
    %13 = tpu.matmul %0, %1, %cst {dimension_numbers = #tpu.dot_dimension_numbers<[1], [0], [0], [1], [0, 0, 1, 1], [], []>} : vector<16x32xf32>, vector<32x96xf32>, vector<16x96xf32> -> vector<16x96xf32>
    %14 = vector.broadcast %5 : vector<1x96xf32> to vector<16x96xf32>
    %15 = arith.addf %13, %14 : vector<16x96xf32>
    %16 = vector.extract_strided_slice %15 {offsets = [0, 0], sizes = [16, 32], strides = [1, 1]} : vector<16x96xf32> to vector<16x32xf32>
    %17 = vector.shape_cast %16 : vector<16x32xf32> to vector<2x8x32xf32>
    %18 = vector.extract_strided_slice %15 {offsets = [0, 32], sizes = [16, 32], strides = [1, 1]} : vector<16x96xf32> to vector<16x32xf32>
    %19 = vector.shape_cast %18 : vector<16x32xf32> to vector<2x8x32xf32>
    %20 = vector.extract_strided_slice %15 {offsets = [0, 64], sizes = [16, 32], strides = [1, 1]} : vector<16x96xf32> to vector<16x32xf32>
    %21 = vector.shape_cast %20 : vector<16x32xf32> to vector<2x8x32xf32>
    %22 = vector.extract_strided_slice %17 {offsets = [0, 0, 0], sizes = [2, 8, 8], strides = [1, 1, 1]} : vector<2x8x32xf32> to vector<2x8x8xf32>
    %23 = vector.extract_strided_slice %19 {offsets = [0, 0, 0], sizes = [2, 8, 8], strides = [1, 1, 1]} : vector<2x8x32xf32> to vector<2x8x8xf32>
    %24 = vector.extract_strided_slice %21 {offsets = [0, 0, 0], sizes = [2, 8, 8], strides = [1, 1, 1]} : vector<2x8x32xf32> to vector<2x8x8xf32>
    %cst_15 = arith.constant dense<0.000000e+00> : vector<2x8x8xf32>
    %25 = tpu.matmul %22, %23, %cst_15 {dimension_numbers = #tpu.dot_dimension_numbers<[2], [2], [1], [1], [0, 0, 0, 1, 1, 1], [0], [0]>} : vector<2x8x8xf32>, vector<2x8x8xf32>, vector<2x8x8xf32> -> vector<2x8x8xf32>
    %cst_16 = arith.constant dense<0xFF800000> : vector<2x8xf32>
    %26 = vector.multi_reduction <maximumf>, %25, %cst_16 [2] : vector<2x8x8xf32> to vector<2x8xf32>
    %27 = vector.shape_cast %26 : vector<2x8xf32> to vector<2x8x1xf32>
    %28 = vector.broadcast %27 : vector<2x8x1xf32> to vector<2x8x8xf32>
    %29 = arith.subf %25, %28 : vector<2x8x8xf32>
    %30 = math.exp %29 : vector<2x8x8xf32>
    %cst_17 = arith.constant dense<0.000000e+00> : vector<2x8xf32>
    %31 = vector.multi_reduction <add>, %30, %cst_17 [2] : vector<2x8x8xf32> to vector<2x8xf32>
    %32 = vector.shape_cast %31 : vector<2x8xf32> to vector<2x8x1xf32>
    %33 = tpu.reciprocal %32 {approx = true} : vector<2x8x1xf32> -> vector<2x8x1xf32>
    %34 = vector.broadcast %33 : vector<2x8x1xf32> to vector<2x8x8xf32>
    %35 = arith.mulf %30, %34 : vector<2x8x8xf32>
    %cst_18 = arith.constant dense<0.000000e+00> : vector<2x8x8xf32>
    %36 = tpu.matmul %35, %24, %cst_18 {dimension_numbers = #tpu.dot_dimension_numbers<[2], [1], [1], [2], [0, 0, 0, 1, 1, 2], [0], [0]>} : vector<2x8x8xf32>, vector<2x8x8xf32>, vector<2x8x8xf32> -> vector<2x8x8xf32>
    %37 = vector.shape_cast %36 : vector<2x8x8xf32> to vector<16x8xf32>
    %38 = vector.extract_strided_slice %2 {offsets = [0, 0], sizes = [8, 32], strides = [1, 1]} : vector<32x32xf32> to vector<8x32xf32>
    %cst_19 = arith.constant dense<0.000000e+00> : vector<16x32xf32>
    %39 = tpu.matmul %37, %38, %cst_19 {dimension_numbers = #tpu.dot_dimension_numbers<[1], [0], [0], [1], [0, 0, 1, 1], [], []>} : vector<16x8xf32>, vector<8x32xf32>, vector<16x32xf32> -> vector<16x32xf32>
    %40 = vector.extract_strided_slice %17 {offsets = [0, 0, 8], sizes = [2, 8, 8], strides = [1, 1, 1]} : vector<2x8x32xf32> to vector<2x8x8xf32>
    %41 = vector.extract_strided_slice %19 {offsets = [0, 0, 8], sizes = [2, 8, 8], strides = [1, 1, 1]} : vector<2x8x32xf32> to vector<2x8x8xf32>
    %42 = vector.extract_strided_slice %21 {offsets = [0, 0, 8], sizes = [2, 8, 8], strides = [1, 1, 1]} : vector<2x8x32xf32> to vector<2x8x8xf32>
    %cst_20 = arith.constant dense<0.000000e+00> : vector<2x8x8xf32>
    %43 = tpu.matmul %40, %41, %cst_20 {dimension_numbers = #tpu.dot_dimension_numbers<[2], [2], [1], [1], [0, 0, 0, 1, 1, 1], [0], [0]>} : vector<2x8x8xf32>, vector<2x8x8xf32>, vector<2x8x8xf32> -> vector<2x8x8xf32>
    %cst_21 = arith.constant dense<0xFF800000> : vector<2x8xf32>
    %44 = vector.multi_reduction <maximumf>, %43, %cst_21 [2] : vector<2x8x8xf32> to vector<2x8xf32>
    %45 = vector.shape_cast %44 : vector<2x8xf32> to vector<2x8x1xf32>
    %46 = vector.broadcast %45 : vector<2x8x1xf32> to vector<2x8x8xf32>
    %47 = arith.subf %43, %46 : vector<2x8x8xf32>
    %48 = math.exp %47 : vector<2x8x8xf32>
    %cst_22 = arith.constant dense<0.000000e+00> : vector<2x8xf32>
    %49 = vector.multi_reduction <add>, %48, %cst_22 [2] : vector<2x8x8xf32> to vector<2x8xf32>
    %50 = vector.shape_cast %49 : vector<2x8xf32> to vector<2x8x1xf32>
    %51 = tpu.reciprocal %50 {approx = true} : vector<2x8x1xf32> -> vector<2x8x1xf32>
    %52 = vector.broadcast %51 : vector<2x8x1xf32> to vector<2x8x8xf32>
    %53 = arith.mulf %48, %52 : vector<2x8x8xf32>
    %cst_23 = arith.constant dense<0.000000e+00> : vector<2x8x8xf32>
    %54 = tpu.matmul %53, %42, %cst_23 {dimension_numbers = #tpu.dot_dimension_numbers<[2], [1], [1], [2], [0, 0, 0, 1, 1, 2], [0], [0]>} : vector<2x8x8xf32>, vector<2x8x8xf32>, vector<2x8x8xf32> -> vector<2x8x8xf32>
    %55 = vector.shape_cast %54 : vector<2x8x8xf32> to vector<16x8xf32>
    %56 = vector.extract_strided_slice %2 {offsets = [8, 0], sizes = [8, 32], strides = [1, 1]} : vector<32x32xf32> to vector<8x32xf32>
    %cst_24 = arith.constant dense<0.000000e+00> : vector<16x32xf32>
    %57 = tpu.matmul %55, %56, %cst_24 {dimension_numbers = #tpu.dot_dimension_numbers<[1], [0], [0], [1], [0, 0, 1, 1], [], []>} : vector<16x8xf32>, vector<8x32xf32>, vector<16x32xf32> -> vector<16x32xf32>
    %58 = arith.addf %39, %57 : vector<16x32xf32>
    %59 = vector.extract_strided_slice %17 {offsets = [0, 0, 16], sizes = [2, 8, 8], strides = [1, 1, 1]} : vector<2x8x32xf32> to vector<2x8x8xf32>
    %60 = vector.extract_strided_slice %19 {offsets = [0, 0, 16], sizes = [2, 8, 8], strides = [1, 1, 1]} : vector<2x8x32xf32> to vector<2x8x8xf32>
    %61 = vector.extract_strided_slice %21 {offsets = [0, 0, 16], sizes = [2, 8, 8], strides = [1, 1, 1]} : vector<2x8x32xf32> to vector<2x8x8xf32>
    %cst_25 = arith.constant dense<0.000000e+00> : vector<2x8x8xf32>
    %62 = tpu.matmul %59, %60, %cst_25 {dimension_numbers = #tpu.dot_dimension_numbers<[2], [2], [1], [1], [0, 0, 0, 1, 1, 1], [0], [0]>} : vector<2x8x8xf32>, vector<2x8x8xf32>, vector<2x8x8xf32> -> vector<2x8x8xf32>
    %cst_26 = arith.constant dense<0xFF800000> : vector<2x8xf32>
    %63 = vector.multi_reduction <maximumf>, %62, %cst_26 [2] : vector<2x8x8xf32> to vector<2x8xf32>
    %64 = vector.shape_cast %63 : vector<2x8xf32> to vector<2x8x1xf32>
    %65 = vector.broadcast %64 : vector<2x8x1xf32> to vector<2x8x8xf32>
    %66 = arith.subf %62, %65 : vector<2x8x8xf32>
    %67 = math.exp %66 : vector<2x8x8xf32>
    %cst_27 = arith.constant dense<0.000000e+00> : vector<2x8xf32>
    %68 = vector.multi_reduction <add>, %67, %cst_27 [2] : vector<2x8x8xf32> to vector<2x8xf32>
    %69 = vector.shape_cast %68 : vector<2x8xf32> to vector<2x8x1xf32>
    %70 = tpu.reciprocal %69 {approx = true} : vector<2x8x1xf32> -> vector<2x8x1xf32>
    %71 = vector.broadcast %70 : vector<2x8x1xf32> to vector<2x8x8xf32>
    %72 = arith.mulf %67, %71 : vector<2x8x8xf32>
    %cst_28 = arith.constant dense<0.000000e+00> : vector<2x8x8xf32>
    %73 = tpu.matmul %72, %61, %cst_28 {dimension_numbers = #tpu.dot_dimension_numbers<[2], [1], [1], [2], [0, 0, 0, 1, 1, 2], [0], [0]>} : vector<2x8x8xf32>, vector<2x8x8xf32>, vector<2x8x8xf32> -> vector<2x8x8xf32>
    %74 = vector.shape_cast %73 : vector<2x8x8xf32> to vector<16x8xf32>
    %75 = vector.extract_strided_slice %2 {offsets = [16, 0], sizes = [8, 32], strides = [1, 1]} : vector<32x32xf32> to vector<8x32xf32>
    %cst_29 = arith.constant dense<0.000000e+00> : vector<16x32xf32>
    %76 = tpu.matmul %74, %75, %cst_29 {dimension_numbers = #tpu.dot_dimension_numbers<[1], [0], [0], [1], [0, 0, 1, 1], [], []>} : vector<16x8xf32>, vector<8x32xf32>, vector<16x32xf32> -> vector<16x32xf32>
    %77 = arith.addf %58, %76 : vector<16x32xf32>
    %78 = vector.extract_strided_slice %17 {offsets = [0, 0, 24], sizes = [2, 8, 8], strides = [1, 1, 1]} : vector<2x8x32xf32> to vector<2x8x8xf32>
    %79 = vector.extract_strided_slice %19 {offsets = [0, 0, 24], sizes = [2, 8, 8], strides = [1, 1, 1]} : vector<2x8x32xf32> to vector<2x8x8xf32>
    %80 = vector.extract_strided_slice %21 {offsets = [0, 0, 24], sizes = [2, 8, 8], strides = [1, 1, 1]} : vector<2x8x32xf32> to vector<2x8x8xf32>
    %cst_30 = arith.constant dense<0.000000e+00> : vector<2x8x8xf32>
    %81 = tpu.matmul %78, %79, %cst_30 {dimension_numbers = #tpu.dot_dimension_numbers<[2], [2], [1], [1], [0, 0, 0, 1, 1, 1], [0], [0]>} : vector<2x8x8xf32>, vector<2x8x8xf32>, vector<2x8x8xf32> -> vector<2x8x8xf32>
    %cst_31 = arith.constant dense<0xFF800000> : vector<2x8xf32>
    %82 = vector.multi_reduction <maximumf>, %81, %cst_31 [2] : vector<2x8x8xf32> to vector<2x8xf32>
    %83 = vector.shape_cast %82 : vector<2x8xf32> to vector<2x8x1xf32>
    %84 = vector.broadcast %83 : vector<2x8x1xf32> to vector<2x8x8xf32>
    %85 = arith.subf %81, %84 : vector<2x8x8xf32>
    %86 = math.exp %85 : vector<2x8x8xf32>
    %cst_32 = arith.constant dense<0.000000e+00> : vector<2x8xf32>
    %87 = vector.multi_reduction <add>, %86, %cst_32 [2] : vector<2x8x8xf32> to vector<2x8xf32>
    %88 = vector.shape_cast %87 : vector<2x8xf32> to vector<2x8x1xf32>
    %89 = tpu.reciprocal %88 {approx = true} : vector<2x8x1xf32> -> vector<2x8x1xf32>
    %90 = vector.broadcast %89 : vector<2x8x1xf32> to vector<2x8x8xf32>
    %91 = arith.mulf %86, %90 : vector<2x8x8xf32>
    %cst_33 = arith.constant dense<0.000000e+00> : vector<2x8x8xf32>
    %92 = tpu.matmul %91, %80, %cst_33 {dimension_numbers = #tpu.dot_dimension_numbers<[2], [1], [1], [2], [0, 0, 0, 1, 1, 2], [0], [0]>} : vector<2x8x8xf32>, vector<2x8x8xf32>, vector<2x8x8xf32> -> vector<2x8x8xf32>
    %93 = vector.shape_cast %92 : vector<2x8x8xf32> to vector<16x8xf32>
    %94 = vector.extract_strided_slice %2 {offsets = [24, 0], sizes = [8, 32], strides = [1, 1]} : vector<32x32xf32> to vector<8x32xf32>
    %cst_34 = arith.constant dense<0.000000e+00> : vector<16x32xf32>
    %95 = tpu.matmul %93, %94, %cst_34 {dimension_numbers = #tpu.dot_dimension_numbers<[1], [0], [0], [1], [0, 0, 1, 1], [], []>} : vector<16x8xf32>, vector<8x32xf32>, vector<16x32xf32> -> vector<16x32xf32>
    %96 = arith.addf %77, %95 : vector<16x32xf32>
    %97 = vector.broadcast %6 : vector<1x32xf32> to vector<16x32xf32>
    %98 = arith.addf %96, %97 : vector<16x32xf32>
    %99 = arith.addf %0, %98 : vector<16x32xf32>
    %cst_35 = arith.constant dense<0.000000e+00> : vector<16xf32>
    %100 = vector.multi_reduction <add>, %99, %cst_35 [1] : vector<16x32xf32> to vector<16xf32>
    %101 = vector.shape_cast %100 : vector<16xf32> to vector<16x1xf32>
    %cst_36 = arith.constant 3.200000e+01 : f32
    %102 = vector.broadcast %cst_36 : f32 to vector<16x1xf32>
    %103 = arith.divf %101, %102 : vector<16x1xf32>
    %104 = vector.broadcast %103 : vector<16x1xf32> to vector<16x32xf32>
    %105 = arith.subf %99, %104 : vector<16x32xf32>
    %106 = arith.mulf %105, %105 : vector<16x32xf32>
    %cst_37 = arith.constant dense<0.000000e+00> : vector<16xf32>
    %107 = vector.multi_reduction <add>, %106, %cst_37 [1] : vector<16x32xf32> to vector<16xf32>
    %108 = vector.shape_cast %107 : vector<16xf32> to vector<16x1xf32>
    %cst_38 = arith.constant 3.200000e+01 : f32
    %109 = vector.broadcast %cst_38 : f32 to vector<16x1xf32>
    %110 = arith.divf %108, %109 : vector<16x1xf32>
    %cst_39 = arith.constant 9.99999974E-6 : f32
    %111 = vector.broadcast %cst_39 : f32 to vector<16x1xf32>
    %112 = arith.addf %110, %111 : vector<16x1xf32>
    %113 = math.rsqrt %112 : vector<16x1xf32>
    %114 = vector.broadcast %113 : vector<16x1xf32> to vector<16x32xf32>
    %115 = arith.mulf %105, %114 : vector<16x32xf32>
    %116 = vector.broadcast %9 : vector<1x32xf32> to vector<16x32xf32>
    %117 = arith.mulf %115, %116 : vector<16x32xf32>
    %118 = vector.broadcast %10 : vector<1x32xf32> to vector<16x32xf32>
    %119 = arith.addf %117, %118 : vector<16x32xf32>
    %cst_40 = arith.constant dense<0.000000e+00> : vector<16x64xf32>
    %120 = tpu.matmul %119, %3, %cst_40 {dimension_numbers = #tpu.dot_dimension_numbers<[1], [0], [0], [1], [0, 0, 1, 1], [], []>} : vector<16x32xf32>, vector<32x64xf32>, vector<16x64xf32> -> vector<16x64xf32>
    %121 = vector.broadcast %7 : vector<1x64xf32> to vector<16x64xf32>
    %122 = arith.addf %120, %121 : vector<16x64xf32>
    %cst_41 = arith.constant 0.000000e+00 : f32
    %123 = vector.broadcast %cst_41 : f32 to vector<16x64xf32>
    %124 = arith.maximumf %122, %123 : vector<16x64xf32>
    %cst_42 = arith.constant dense<0.000000e+00> : vector<16x32xf32>
    %125 = tpu.matmul %124, %4, %cst_42 {dimension_numbers = #tpu.dot_dimension_numbers<[1], [1], [0], [0], [0, 0, 1, 0], [], []>} : vector<16x64xf32>, vector<32x64xf32>, vector<16x32xf32> -> vector<16x32xf32>
    %126 = vector.broadcast %8 : vector<1x32xf32> to vector<16x32xf32>
    %127 = arith.addf %125, %126 : vector<16x32xf32>
    %128 = arith.addf %119, %127 : vector<16x32xf32>
    %cst_43 = arith.constant dense<0.000000e+00> : vector<16xf32>
    %129 = vector.multi_reduction <add>, %128, %cst_43 [1] : vector<16x32xf32> to vector<16xf32>
    %130 = vector.shape_cast %129 : vector<16xf32> to vector<16x1xf32>
    %cst_44 = arith.constant 3.200000e+01 : f32
    %131 = vector.broadcast %cst_44 : f32 to vector<16x1xf32>
    %132 = arith.divf %130, %131 : vector<16x1xf32>
    %133 = vector.broadcast %132 : vector<16x1xf32> to vector<16x32xf32>
    %134 = arith.subf %128, %133 : vector<16x32xf32>
    %135 = arith.mulf %134, %134 : vector<16x32xf32>
    %cst_45 = arith.constant dense<0.000000e+00> : vector<16xf32>
    %136 = vector.multi_reduction <add>, %135, %cst_45 [1] : vector<16x32xf32> to vector<16xf32>
    %137 = vector.shape_cast %136 : vector<16xf32> to vector<16x1xf32>
    %cst_46 = arith.constant 3.200000e+01 : f32
    %138 = vector.broadcast %cst_46 : f32 to vector<16x1xf32>
    %139 = arith.divf %137, %138 : vector<16x1xf32>
    %cst_47 = arith.constant 9.99999974E-6 : f32
    %140 = vector.broadcast %cst_47 : f32 to vector<16x1xf32>
    %141 = arith.addf %139, %140 : vector<16x1xf32>
    %142 = math.rsqrt %141 : vector<16x1xf32>
    %143 = vector.broadcast %142 : vector<16x1xf32> to vector<16x32xf32>
    %144 = arith.mulf %134, %143 : vector<16x32xf32>
    %145 = vector.broadcast %11 : vector<1x32xf32> to vector<16x32xf32>
    %146 = arith.mulf %144, %145 : vector<16x32xf32>
    %147 = vector.broadcast %12 : vector<1x32xf32> to vector<16x32xf32>
    %148 = arith.addf %146, %147 : vector<16x32xf32>
    %c0_48 = arith.constant 0 : index
    %c0_49 = arith.constant 0 : index
    %149 = vector.load %arg3[%c0_48, %c0_49] : memref<16x32xf32, #tpu.memory_space<vmem>>, vector<16x32xf32>
    tpu.vector_store %arg3[%c0_48, %c0_49], %148 {strides = array<i32>} : memref<16x32xf32, #tpu.memory_space<vmem>>, vector<16x32xf32>,
    return
  }
}

</mosaic_0001>

<bundles_post_ra>
// kernel: tpu_custom_call.1
= control target key start
LH: loop header
LB: loop body
LE: loop exit
PB: predicated region body
PF: predicated region fallthrough
CT: control target
= control target key end

     0   :  { %8 = vsyncpa [#allocation3], 0  ;;  %s2771_s0 = inlined_call_operand.hbm [shape: f32[16,32], index: 0, kind: input, shape index: {}]   ;;  %s2772_s1 = inlined_call_operand.hbm [shape: f32[32,256], index: 1, kind: input, shape index: {}]   ;;  %s2773_s2 = inlined_call_operand.hbm [shape: f32[8,96], index: 2, kind: input, shape index: {}]   ;;  %s2774_s3 = inlined_call_operand.hbm [shape: f32[16,32], index: 3, kind: output, shape index: {}]  }
   0x1   :  { %9 = vsyncpa [#allocation6], 0 }
   0x2   :  { %10 = vsyncpa [#allocation4], 0  ;;  %s2514_s12 = smov [#allocation5]  }
   0x3   :  { %s28_s13 = sshll.u32 %s2514_s12, 4  ;;  %s29_s13 = int_to_ptr.vmem [resolvable:$true] %s28_s13 }
   0x4   :  { %s2436_s14 = scalar_lea.vmem %s29_s13, 1024  ;;  %p2441_p1 = scmp.lt.s32.totalorder %s29_s13, %s29_s13 }
   0x5   :  { %p2437_p0 = scmp.ne.s32.totalorder %s29_s13, %s2436_s14  ;;  %p2442_p2 = scmp.lt.s32.totalorder %s2436_s14, %s2436_s14 }
   0x7   :  { %p2443_p3 = por %p2442_p2, %p2441_p1 }
   0x9   :  { %p2444_p4 = pnand %p2443_p3, %p2437_p0 }
   0xb   :  { %2447 = shalt.err (!%p2444_p4)
}
   0xc   :  { %s2515_s15 = smov 256   ;;  %s2516_s16 = smov 16  }
   0xd   :  { %34 = dma.hbm_to_vmem [thread:$0]  %s2772_s1, 1024, %s29_s13, [#allocation6], %s2515_s15, %s2515_s15, %s2516_s16  }
   0xe   :  { %s2517_s19 = smov [#allocation2]  }
   0xf   :  { %s16_s20 = sshll.u32 %s2517_s19, 4  ;;  %s17_s20 = int_to_ptr.vmem [resolvable:$true] %s16_s20 }
  0x10   :  { %s2456_s21 = scalar_lea.vmem %s17_s20, 256  ;;  %p2461_p6 = scmp.lt.s32.totalorder %s17_s20, %s17_s20 }
  0x11   :  { %p2457_p5 = scmp.ne.s32.totalorder %s17_s20, %s2456_s21  ;;  %p2462_p7 = scmp.lt.s32.totalorder %s2456_s21, %s2456_s21 }
  0x13   :  { %p2463_p8 = por %p2462_p7, %p2461_p6 }
  0x15   :  { %p2464_p9 = pnand %p2463_p8, %p2457_p5 }
  0x17   :  { %2467 = shalt.err (!%p2464_p9)
}
  0x18   :  { %s2518_s22 = smov 128   ;;  %s2519_s23 = smov 8  }
  0x19   :  { %22 = dma.hbm_to_vmem [thread:$0]  %s2771_s0, 256, %s17_s20, [#allocation3], %s2518_s22, %s2518_s22, %s2519_s23  }
  0x1a   :  { %s2520_s1 = smov [#allocation7]  }
  0x1b   :  { %s41_s26 = sshll.u32 %s2520_s1, 4  ;;  %s42_s26 = int_to_ptr.vmem [resolvable:$true] %s41_s26 }
  0x1c   :  { %s2476_s27 = scalar_lea.vmem %s42_s26, 128  ;;  %p2481_p11 = scmp.lt.s32.totalorder %s42_s26, %s42_s26 }
  0x1d   :  { %p2477_p10 = scmp.ne.s32.totalorder %s42_s26, %s2476_s27  ;;  %p2482_p12 = scmp.lt.s32.totalorder %s2476_s27, %s2476_s27 }
  0x1f   :  { %p2483_p13 = por %p2482_p12, %p2481_p11 }
  0x21   :  { %p2484_p0 = pnand %p2483_p13, %p2477_p10 }
  0x23   :  { %2487 = shalt.err (!%p2484_p0)
}
  0x24   :  { %44 = dma.hbm_to_vmem [thread:$0]  %s2773_s2, 128, %s42_s26, [#allocation6]  }
  0x25   :  { %2508 = dma.done.wait [#allocation3], 256  }
  0x26   :  { %2509 = vsyncadd [#allocation3], 4294967040 }
  0x27   :  { %2510 = dma.done.wait [#allocation6], 1152  }
  0x28   :  { %2511 = vsyncadd [#allocation6], 4294966144  ;;  %vm76_vm0 = vcmask 261120   ;;  %v2568_v0 = vld [vmem:[#allocation5 + $0x30] sm:$0xff]  ;;  %v2570_v1 = vld [vmem:[#allocation5 + $0x20] sm:$0xff]  ;;  %v2521_v6 = vmov 0.0  }
  0x29   :  { %2233 = vmatprep.subr.mxu0 %v2568_v0  ;;  %v2573_v2 = vld [vmem:[#allocation2] sm:$0xff]  ;;  %v2582_v4 = vld [vmem:[#allocation5] sm:$0xff]  ;;  %v2586_v5 = vld [vmem:[#allocation2 + $0x8] sm:$0xff]  ;;  %2249 = vmatprep.subr.mxu1 %v2521_v6  ;;  %vm2522_vm1 = vmmov 0   ;;  %s2523_s0 = smov 96   ;;  %vm161_vm2 = vcmask 64512  }
  0x2a   :  { %2234 = vmatpush3.msra.mxu0 %v2568_v0  ;;  %v2576_v3 = vld [vmem:[#allocation5 + $0x10] sm:$0xff]  ;;  %2241 = vmatprep.mubr.msk.f32.mxu0 %vm76_vm0, %v2573_v2  ;;  %v2121_v8 = vld [vmem:[#allocation7] ss:$0 sm:$0xff]  ;;  %s2524_s2 = smov 64   ;;  %s2525_s30 = smov 120   ;;  %vm1971_vm3 = vcmask 523264  }
  0x2b   :  { %2235 = vmatprep.subr.mxu0 %v2570_v1  ;;  %2251 = vmatprep.mubr.msk.f32.mxu1 %vm2522_vm1, %v2521_v6  ;;  %s2526_s4 = smov 88   ;;  %s2527_s5 = smov 56  }
  0x2c   :  { %2236 = vmatpush3.msra.mxu0 %v2570_v1  ;;  %s2528_s6 = smov 80   ;;  %s2529_s7 = smov 112  }
  0x2d   :  { %2237 = vmatprep.subr.mxu0 %v2576_v3  ;;  %s2530_s8 = smov 32   ;;  %s2531_s9 = smov 48  }
  0x2e   :  { %2238 = vmatpush3.msra.mxu0 %v2576_v3  ;;  %s2532_s10 = smov 72   ;;  %s2533_s11 = smov 104  }
  0x2f   :  { %2239 = vmatprep.subr.mxu0 %v2582_v4  ;;  %s2534_s12 = smov 40   ;;  %s2535_s13 = smov [#allocation8]  }
  0x30   :  { %2240 = vmatpush3.msra.mxu0 %v2582_v4  ;;  %s2108_s14 = sshll.u32 %s2535_s13, 4  ;;  %s2109_s14 = int_to_ptr.vmem [resolvable:$true] %s2108_s14 }
  0x31   :  { %2242 = vmatmul.mubr.msk.f32.vlgmr.msra.gmra.mxu0 %vm76_vm0, %v2586_v5  ;;  %2244 = vmatprep.subr.mxu0 %v2521_v6  ;;  %s2488_s15 = scalar_lea.vmem %s2109_s14, 256  ;;  %p2493_p2 = scmp.lt.s32.totalorder %s2109_s14, %s2109_s14 }
  0x32   :  { %2246 = vmatprep.mubr.msk.f32.mxu0 %vm2522_vm1, %v2521_v6  ;;  %p2489_p1 = scmp.ne.s32.totalorder %s2109_s14, %s2488_s15  ;;  %p2494_p3 = scmp.lt.s32.totalorder %s2488_s15, %s2488_s15 }
  0x34   :  { %p2495_p4 = por %p2494_p3, %p2493_p2 }
  0x36   :  { %p2496_p5 = pnand %p2495_p4, %p2489_p1 }
  0xf1   :  { %v2243_v7 = vpop.f32.mrf.mxu0 }
  0xf2   :  { %v2601_v11 = vadd.f32 %v2243_v7, %v2121_v8 }
  0xf3   :  { %v149_v9 = vpop.f32.mrf.mxu0 }
  0xf4   :  { %v2598_v10 = vadd.f32 %v2121_v8, %v149_v9 }
  0xf6   :  { %159 = vrot.lane.b32.xlu0 %v2598_v10, %s2523_s0 }
  0xfa   :  { %237 = vrot.lane.b32.xlu0 %v2601_v11, %s2523_s0 }
 0x168   :  { %v160_v12 = vpop.permute.xlu0 %159 }
 0x169   :  { %2245 = vmatpush3.xpose.msk.msra.mxu0 %vm161_vm2, %v160_v12 }
 0x16a   :  { %2254 = vmatprep.subr.mxu0 %v2521_v6 }
 0x16c   :  { %2247 = vmatmul.mubr.msk.f32.vlgmr.msra.gmra.mxu0 %vm161_vm2, %v2598_v10  ;;  %v238_v13 = vpop.permute.xlu0 %237 }
 0x16d   :  { %2250 = vmatpush3.xpose.msk.msra.mxu1 %vm161_vm2, %v238_v13  ;;  %2256 = vmatprep.mubr.msk.f32.mxu0 %vm2522_vm1, %v2521_v6 }
 0x16e   :  { %2259 = vmatprep.subr.mxu1 %v2521_v6 }
 0x170   :  { %2252 = vmatmul.mubr.msk.f32.vlgmr.msra.gmra.mxu1 %vm161_vm2, %v2601_v11 }
 0x171   :  { %2261 = vmatprep.mubr.msk.f32.mxu1 %vm2522_vm1, %v2521_v6 }
 0x22c   :  { %v232_v14 = vpop.f32.mrf.mxu0 }
 0x22d   :  { %v313_v15 = vsel %vm161_vm2, %v232_v14, -inf }
 0x22e   :  { %314 = vmax.xlane.f32.xlu1 %v313_v15  ;;  %v2248_v16 = vpop.f32.mrf.mxu0 }
 0x230   :  { %v309_v17 = vpop.f32.mrf.mxu1 }
 0x231   :  { %v316_v18 = vsel %vm161_vm2, %v309_v17, -inf }
 0x232   :  { %317 = vmax.xlane.f32.xlu1 %v316_v18  ;;  %v2253_v19 = vpop.f32.mrf.mxu1 }
 0x2b7   :  { %v315_v20 = vpop.xlane.xlu1 %314 }
 0x2b8   :  { %v319_v21 = vsub.f32 %v232_v14, %v315_v20 }
 0x2ba   :  { %v321_v22 = vmul.f32 1.442695, %v319_v21 }
 0x2bb   :  { %v318_v23 = vpop.xlane.xlu1 %317 }
 0x2bc   :  { %2388 = vpow2.f32 %v321_v22  ;;  %v320_v24 = vsub.f32 %v309_v17, %v318_v23 }
 0x2be   :  { %v323_v25 = vmul.f32 1.442695, %v320_v24 }
 0x2c0   :  { %2390 = vpow2.f32 %v323_v25 }
 0x2c9   :  { %v2389_v26 = vpop.eup %2388 }
 0x2ca   :  { %v325_v27 = vsel %vm161_vm2, %v2389_v26, 0.0 }
 0x2cb   :  { %326 = vadd.xlane.f32.xlu0 %v325_v27 }
 0x2cd   :  { %v2391_v28 = vpop.eup %2390 }
 0x2ce   :  { %v328_v29 = vsel %vm161_vm2, %v2391_v28, 0.0 }
 0x2cf   :  { %329 = vadd.xlane.f32.xlu1 %v328_v29 }
 0x2e0   :  { %335 = vrot.lane.b32.xlu1 %v2598_v10, %s2524_s2 }
 0x2e1   :  { %487 = vrot.lane.b32.xlu0 %v2598_v10, %s2525_s30 }
 0x2e4   :  { %411 = vrot.lane.b32.xlu1 %v2601_v11, %s2524_s2 }
 0x2e8   :  { %489 = vrot.lane.b32.xlu1 %v2598_v10, %s2526_s4 }
 0x2ec   :  { %567 = vrot.lane.b32.xlu1 %v2601_v11, %s2526_s4 }
 0x2f0   :  { %565 = vrot.lane.b32.xlu1 %v2601_v11, %s2525_s30 }
 0x354   :  { %v327_v30 = vpop.xlane.xlu0 %326 }
 0x355   :  { %2392 = vrcp.f32 %v327_v30 }
 0x358   :  { %v330_v31 = vpop.xlane.xlu1 %329  ;;  %v488_v39 = vpop.permute.xlu0 %487 }
 0x359   :  { %2394 = vrcp.f32 %v330_v31 }
 0x35c   :  { %v336_v32 = vpop.permute.xlu1 %335 }
 0x35d   :  { %2255 = vmatpush3.msra.mxu0 %v336_v32 }
 0x35e   :  { %2264 = vmatprep.subr.mxu0 %v2521_v6 }
 0x360   :  { %v412_v33 = vpop.permute.xlu1 %411 }
 0x361   :  { %2260 = vmatpush3.msra.mxu1 %v412_v33 }
 0x362   :  { %v2393_v34 = vpop.eup %2392  ;;  %2269 = vmatprep.subr.mxu1 %v2521_v6 }
 0x363   :  { %v333_v35 = vmul.f32 %v2393_v34, %v2389_v26 }
 0x364   :  { %v490_v36 = vpop.permute.xlu1 %489 }
 0x365   :  { %2257 = vmatmul.mubr.msk.f32.vlgmr.msra.gmra.mxu0 %vm161_vm2, %v333_v35 }
 0x366   :  { %v2395_v37 = vpop.eup %2394  ;;  %2265 = vmatpush3.xpose.msk.msra.mxu0 %vm161_vm2, %v490_v36  ;;  %2266 = vmatprep.mubr.msk.f32.mxu0 %vm2522_vm1, %v2521_v6 }
 0x367   :  { %v334_v38 = vmul.f32 %v2395_v37, %v2391_v28  ;;  %2274 = vmatprep.subr.mxu0 %v2521_v6 }
 0x368   :  { %v568_v40 = vpop.permute.xlu1 %567 }
 0x369   :  { %2262 = vmatmul.mubr.msk.f32.vlgmr.msra.gmra.mxu1 %vm161_vm2, %v334_v38  ;;  %2267 = vmatmul.mubr.msk.f32.vlgmr.msra.gmra.mxu0 %vm161_vm2, %v488_v39 }
 0x36a   :  { %2270 = vmatpush3.xpose.msk.msra.mxu1 %vm161_vm2, %v568_v40  ;;  %2271 = vmatprep.mubr.msk.f32.mxu1 %vm2522_vm1, %v2521_v6 }
 0x36b   :  { %2279 = vmatprep.subr.mxu1 %v2521_v6  ;;  %2276 = vmatprep.mubr.msk.f32.mxu0 %vm2522_vm1, %v2521_v6 }
 0x36c   :  { %v566_v41 = vpop.permute.xlu1 %565 }
 0x36d   :  { %2272 = vmatmul.mubr.msk.f32.vlgmr.msra.gmra.mxu1 %vm161_vm2, %v566_v41 }
 0x36e   :  { %2281 = vmatprep.mubr.msk.f32.mxu1 %vm2522_vm1, %v2521_v6 }
 0x425   :  { %v407_v42 = vpop.f32.mrf.mxu0 }
 0x427   :  { %v2258_v43 = vpop.f32.mrf.mxu0 }
 0x429   :  { %v483_v44 = vpop.f32.mrf.mxu1  ;;  %v561_v45 = vpop.f32.mrf.mxu0 }
 0x42a   :  { %v643_v46 = vsel %vm161_vm2, %v561_v45, -inf }
 0x42b   :  { %v2263_v47 = vpop.f32.mrf.mxu1  ;;  %644 = vmax.xlane.f32.xlu1 %v643_v46  ;;  %v2268_v48 = vpop.f32.mrf.mxu0 }
 0x42d   :  { %v639_v49 = vpop.f32.mrf.mxu1 }
 0x42e   :  { %v646_v50 = vsel %vm161_vm2, %v639_v49, -inf }
 0x42f   :  { %647 = vmax.xlane.f32.xlu0 %v646_v50  ;;  %v2273_v51 = vpop.f32.mrf.mxu1 }
 0x445   :  { %741 = vrot.lane.b32.xlu0 %v2601_v11, %s2527_s5 }
 0x449   :  { %989 = vrot.lane.b32.xlu0 %v2598_v10, %s2528_s6 }
 0x44d   :  { %987 = vrot.lane.b32.xlu0 %v2598_v10, %s2529_s7 }
 0x4b4   :  { %v645_v52 = vpop.xlane.xlu1 %644 }
 0x4b5   :  { %v649_v53 = vsub.f32 %v561_v45, %v645_v52 }
 0x4b7   :  { %v651_v56 = vmul.f32 1.442695, %v649_v53 }
 0x4b8   :  { %v648_v54 = vpop.xlane.xlu0 %647 }
 0x4b9   :  { %v650_v55 = vsub.f32 %v639_v49, %v648_v54 }
 0x4bb   :  { %v653_v57 = vmul.f32 1.442695, %v650_v55 }
 0x4bc   :  { %v742_v58 = vpop.permute.xlu0 %741 }
 0x4bd   :  { %2396 = vpow2.f32 %v653_v57  ;;  %2280 = vmatpush3.msra.mxu1 %v742_v58 }
 0x4be   :  { %2398 = vpow2.f32 %v651_v56 }
 0x4c0   :  { %v990_v19 = vpop.permute.xlu0 %989 }
 0x4c4   :  { %v988_v25 = vpop.permute.xlu0 %987 }
 0x4ca   :  { %v2397_v59 = vpop.eup %2396 }
 0x4cb   :  { %v658_v60 = vsel %vm161_vm2, %v2397_v59, 0.0  ;;  %v2399_v61 = vpop.eup %2398 }
 0x4cc   :  { %659 = vadd.xlane.f32.xlu1 %v658_v60  ;;  %v655_v62 = vsel %vm161_vm2, %v2399_v61, 0.0 }
 0x4d0   :  { %656 = vadd.xlane.f32.xlu1 %v655_v62 }
 0x4e1   :  { %665 = vrot.lane.b32.xlu1 %v2598_v10, %s2527_s5 }
 0x4e5   :  { %818 = vrot.lane.b32.xlu1 %v2576_v3, %s2530_s8 }
 0x4e9   :  { %903 = vrot.lane.b32.xlu1 %v2582_v4, %s2530_s8 }
 0x4ed   :  { %1067 = vrot.lane.b32.xlu1 %v2601_v11, %s2528_s6 }
 0x4f1   :  { %1065 = vrot.lane.b32.xlu1 %v2601_v11, %s2529_s7 }
 0x555   :  { %v660_v63 = vpop.xlane.xlu1 %659 }
 0x556   :  { %2400 = vrcp.f32 %v660_v63 }
 0x559   :  { %v657_v7 = vpop.xlane.xlu1 %656 }
 0x55a   :  { %2402 = vrcp.f32 %v657_v7 }
 0x55d   :  { %v666_v8 = vpop.permute.xlu1 %665 }
 0x55e   :  { %2275 = vmatpush3.msra.mxu0 %v666_v8 }
 0x561   :  { %v819_v9 = vpop.permute.xlu1 %818 }
 0x562   :  { %2284 = vmatprep.subr.mxu0 %v819_v9 }
 0x563   :  { %v2401_v12 = vpop.eup %2400 }
 0x564   :  { %v664_v13 = vmul.f32 %v2401_v12, %v2397_v59 }
 0x565   :  { %v904_v14 = vpop.permute.xlu1 %903 }
 0x566   :  { %2282 = vmatmul.mubr.msk.f32.vlgmr.msra.gmra.mxu1 %vm161_vm2, %v664_v13  ;;  %2289 = vmatprep.subr.mxu1 %v904_v14 }
 0x567   :  { %v2403_v3 = vpop.eup %2402  ;;  %2291 = vmatprep.mubr.msk.f32.mxu1 %vm161_vm2, %v407_v42  ;;  %2290 = vmatpush3.msra.mxu1 %v904_v14 }
 0x568   :  { %2299 = vmatprep.subr.mxu1 %v2521_v6  ;;  %v663_v4 = vmul.f32 %v2403_v3, %v2399_v61 }
 0x569   :  { %v1068_v15 = vpop.permute.xlu1 %1067 }
 0x56a   :  { %2277 = vmatmul.mubr.msk.f32.vlgmr.msra.gmra.mxu0 %vm161_vm2, %v663_v4  ;;  %2292 = vmatmul.mubr.msk.f32.vlgmr.msra.gmra.mxu1 %vm161_vm2, %v483_v44 }
 0x56b   :  { %2300 = vmatpush3.xpose.msk.msra.mxu1 %vm161_vm2, %v1068_v15  ;;  %2301 = vmatprep.mubr.msk.f32.mxu1 %vm2522_vm1, %v2521_v6 }
 0x56c   :  { %2285 = vmatpush3.msra.mxu0 %v819_v9  ;;  %2309 = vmatprep.subr.mxu1 %v2521_v6 }
 0x56d   :  { %v1066_v16 = vpop.permute.xlu1 %1065  ;;  %2294 = vmatprep.subr.mxu0 %v2521_v6 }
 0x56e   :  { %2302 = vmatmul.mubr.msk.f32.vlgmr.msra.gmra.mxu1 %vm161_vm2, %v1066_v16 }
 0x56f   :  { %2311 = vmatprep.mubr.msk.f32.mxu1 %vm2522_vm1, %v2521_v6 }
 0x626   :  { %v813_v17 = vpop.f32.mrf.mxu1 }
 0x628   :  { %v2283_v18 = vpop.f32.mrf.mxu1 }
 0x62a   :  { %v737_v20 = vpop.f32.mrf.mxu0  ;;  %v2673_v21 = vpop.f32.mrf.mxu1 }
 0x62b   :  { %2286 = vmatprep.mubr.msk.f32.mxu0 %vm161_vm2, %v737_v20 }
 0x62c   :  { %v2278_v22 = vpop.f32.mrf.mxu0  ;;  %2287 = vmatmul.mubr.msk.f32.vlgmr.msra.gmra.mxu0 %vm161_vm2, %v813_v17  ;;  %v2677_v23 = vpop.f32.mrf.mxu1 }
 0x62d   :  { %2295 = vmatpush3.xpose.msk.msra.mxu0 %vm161_vm2, %v990_v19  ;;  %2296 = vmatprep.mubr.msk.f32.mxu0 %vm2522_vm1, %v2521_v6 }
 0x62e   :  { %v1139_v24 = vpop.f32.mrf.mxu1  ;;  %2304 = vmatprep.subr.mxu0 %v2521_v6 }
 0x62f   :  { %v1146_v26 = vsel %vm161_vm2, %v1139_v24, -inf }
 0x630   :  { %1147 = vmax.xlane.f32.xlu1 %v1146_v26  ;;  %2297 = vmatmul.mubr.msk.f32.vlgmr.msra.gmra.mxu0 %vm161_vm2, %v988_v25  ;;  %v2303_v27 = vpop.f32.mrf.mxu1 }
 0x631   :  { %2306 = vmatprep.mubr.msk.f32.mxu0 %vm2522_vm1, %v2521_v6 }
 0x641   :  { %1165 = vrot.lane.b32.xlu1 %v2598_v10, %s2531_s9 }
 0x645   :  { %1318 = vrot.lane.b32.xlu1 %v2570_v1, %s2530_s8 }
 0x649   :  { %1406 = vrot.lane.b32.xlu1 %v2598_v10, %s2532_s10 }
 0x64d   :  { %1404 = vrot.lane.b32.xlu1 %v2598_v10, %s2533_s11 }
 0x6b9   :  { %v1148_v28 = vpop.xlane.xlu1 %1147 }
 0x6ba   :  { %v1150_v31 = vsub.f32 %v1139_v24, %v1148_v28 }
 0x6bc   :  { %v1153_v32 = vmul.f32 1.442695, %v1150_v31 }
 0x6bd   :  { %v1166_v29 = vpop.permute.xlu1 %1165 }
 0x6be   :  { %2305 = vmatpush3.msra.mxu0 %v1166_v29  ;;  %2404 = vpow2.f32 %v1153_v32 }
 0x6c1   :  { %v1319_v30 = vpop.permute.xlu1 %1318 }
 0x6c2   :  { %2314 = vmatprep.subr.mxu0 %v1319_v30 }
 0x6c5   :  { %v1407_v47 = vpop.permute.xlu1 %1406 }
 0x6c9   :  { %v1405_v50 = vpop.permute.xlu1 %1404 }
 0x6cb   :  { %v2405_v36 = vpop.eup %2404 }
 0x6cc   :  { %v1158_v38 = vsel %vm161_vm2, %v2405_v36, 0.0 }
 0x6ec   :  { %v2288_v33 = vpop.f32.mrf.mxu0 }
 0x6ed   :  { %v984_v8 = vadd.f32 %v2673_v21, %v2288_v33 }
 0x6ee   :  { %v2693_v34 = vpop.f32.mrf.mxu0 }
 0x6ef   :  { %v979_v12 = vadd.f32 %v2677_v23, %v2693_v34 }
 0x6f0   :  { %v1061_v35 = vpop.f32.mrf.mxu0 }
 0x6f1   :  { %v1143_v1 = vsel %vm161_vm2, %v1061_v35, -inf }
 0x6f2   :  { %1144 = vmax.xlane.f32.xlu0 %v1143_v1  ;;  %v2298_v37 = vpop.f32.mrf.mxu0 }
 0x6f6   :  { %1159 = vadd.xlane.f32.xlu0 %v1158_v38 }
 0x77b   :  { %v1145_v39 = vpop.xlane.xlu0 %1144 }
 0x77c   :  { %v1149_v40 = vsub.f32 %v1061_v35, %v1145_v39 }
 0x77e   :  { %v1151_v41 = vmul.f32 1.442695, %v1149_v40 }
 0x77f   :  { %v1160_v44 = vpop.xlane.xlu0 %1159 }
 0x780   :  { %2406 = vpow2.f32 %v1151_v41 }
 0x781   :  { %2408 = vrcp.f32 %v1160_v44 }
 0x78d   :  { %v2407_v42 = vpop.eup %2406 }
 0x78e   :  { %v1155_v43 = vsel %vm161_vm2, %v2407_v42, 0.0  ;;  %v2409_v46 = vpop.eup %2408 }
 0x78f   :  { %1156 = vadd.xlane.f32.xlu0 %v1155_v43  ;;  %v1164_v49 = vmul.f32 %v2409_v46, %v2405_v36 }
 0x7a5   :  { %1241 = vrot.lane.b32.xlu0 %v2601_v11, %s2531_s9 }
 0x7a9   :  { %1484 = vrot.lane.b32.xlu0 %v2601_v11, %s2532_s10 }
 0x7ad   :  { %1482 = vrot.lane.b32.xlu0 %v2601_v11, %s2533_s11 }
 0x818   :  { %v1157_v45 = vpop.xlane.xlu0 %1156 }
 0x819   :  { %2410 = vrcp.f32 %v1157_v45 }
 0x81c   :  { %v1242_v48 = vpop.permute.xlu0 %1241 }
 0x81d   :  { %2310 = vmatpush3.msra.mxu1 %v1242_v48 }
 0x81e   :  { %2312 = vmatmul.mubr.msk.f32.vlgmr.msra.gmra.mxu1 %vm161_vm2, %v1164_v49  ;;  %2319 = vmatprep.subr.mxu1 %v2521_v6 }
 0x81f   :  { %2320 = vmatpush3.xpose.msk.msra.mxu1 %vm161_vm2, %v1407_v47  ;;  %2321 = vmatprep.mubr.msk.f32.mxu1 %vm2522_vm1, %v2521_v6 }
 0x820   :  { %2329 = vmatprep.subr.mxu1 %v2521_v6  ;;  %v1485_v58 = vpop.permute.xlu0 %1484 }
 0x822   :  { %2322 = vmatmul.mubr.msk.f32.vlgmr.msra.gmra.mxu1 %vm161_vm2, %v1405_v50 }
 0x823   :  { %2331 = vmatprep.mubr.msk.f32.mxu1 %vm2522_vm1, %v2521_v6 }
 0x824   :  { %v1483_v61 = vpop.permute.xlu0 %1482 }
 0x826   :  { %v2411_v51 = vpop.eup %2410 }
 0x827   :  { %v1163_v52 = vmul.f32 %v2411_v51, %v2407_v42 }
 0x829   :  { %2307 = vmatmul.mubr.msk.f32.vlgmr.msra.gmra.mxu0 %vm161_vm2, %v1163_v52  ;;  %v63_v52 = vld [vmem:[#allocation5 + $0x38] sm:$0xff] }
 0x82a   :  { %2315 = vmatpush3.msra.mxu0 %v1319_v30 }
 0x82b   :  { %2324 = vmatprep.subr.mxu0 %v2521_v6 }
 0x8de   :  { %v1313_v53 = vpop.f32.mrf.mxu1 }
 0x8e0   :  { %v2313_v54 = vpop.f32.mrf.mxu1 }
 0x8e1   :  { %v60_v54 = vld [vmem:[#allocation5 + $0x8] sm:$0xff] }
 0x8e2   :  { %v1478_v55 = vpop.f32.mrf.mxu1 }
 0x8e3   :  { %v1560_v56 = vsel %vm161_vm2, %v1478_v55, -inf }
 0x8e4   :  { %1561 = vmax.xlane.f32.xlu1 %v1560_v56  ;;  %v2323_v57 = vpop.f32.mrf.mxu1 }
 0x8e9   :  { %v1237_v59 = vpop.f32.mrf.mxu0 }
 0x8ea   :  { %2316 = vmatprep.mubr.msk.f32.mxu0 %vm161_vm2, %v1237_v59 }
 0x8eb   :  { %v2308_v60 = vpop.f32.mrf.mxu0  ;;  %2317 = vmatmul.mubr.msk.f32.vlgmr.msra.gmra.mxu0 %vm161_vm2, %v1313_v53  ;;  %v61_v53 = vld [vmem:[#allocation5 + $0x18] sm:$0xff] }
 0x8ec   :  { %2325 = vmatpush3.xpose.msk.msra.mxu0 %vm161_vm2, %v1485_v58  ;;  %2326 = vmatprep.mubr.msk.f32.mxu0 %vm2522_vm1, %v2521_v6 }
 0x8ed   :  { %2334 = vmatprep.subr.mxu0 %v2521_v6 }
 0x8ef   :  { %2327 = vmatmul.mubr.msk.f32.vlgmr.msra.gmra.mxu0 %vm161_vm2, %v1483_v61 }
 0x8f0   :  { %2336 = vmatprep.mubr.msk.f32.mxu0 %vm2522_vm1, %v2521_v6 }
 0x96d   :  { %v1562_v62 = vpop.xlane.xlu1 %1561 }
 0x96e   :  { %v1566_v63 = vsub.f32 %v1478_v55, %v1562_v62 }
 0x970   :  { %v1568_v7 = vmul.f32 1.442695, %v1566_v63 }
 0x972   :  { %2412 = vpow2.f32 %v1568_v7 }
 0x97f   :  { %v2413_v16 = vpop.eup %2412 }
 0x980   :  { %v1572_v6 = vsel %vm161_vm2, %v2413_v16, 0.0 }
 0x9ab   :  { %v2318_v9 = vpop.f32.mrf.mxu0 }
 0x9ac   :  { %v1403_v13 = vadd.f32 %v2318_v9, %v984_v8  ;;  %v2157_v8 = vld [vmem:[#allocation7 + $0x4] ss:$0 sm:$0xff] }
 0x9ad   :  { %v1393_v14 = vpop.f32.mrf.mxu0 }
 0x9ae   :  { %v1402_v3 = vadd.f32 %v1393_v14, %v979_v12  ;;  %v2158_v12 = vld [vmem:[#allocation7 + $0x5] ss:$0 sm:$0xff] }
 0x9af   :  { %v1556_v4 = vpop.f32.mrf.mxu0 }
 0x9b0   :  { %v1563_v15 = vsel %vm161_vm2, %v1556_v4, -inf }
 0x9b1   :  { %1564 = vmax.xlane.f32.xlu0 %v1563_v15  ;;  %v2328_v17 = vpop.f32.mrf.mxu0 }
 0x9b5   :  { %1573 = vadd.xlane.f32.xlu0 %v1572_v6  ;;  %v2159_v6 = vld [vmem:[#allocation7 + $0x2] ss:$0 sm:$0xff] }
 0x9cb   :  { %1582 = vrot.lane.b32.xlu0 %v2598_v10, %s2534_s12 }
 0xa3a   :  { %v1565_v18 = vpop.xlane.xlu0 %1564 }
 0xa3b   :  { %v1567_v19 = vsub.f32 %v1556_v4, %v1565_v18 }
 0xa3d   :  { %v1570_v20 = vmul.f32 1.442695, %v1567_v19 }
 0xa3e   :  { %v1574_v21 = vpop.xlane.xlu0 %1573 }
 0xa3f   :  { %2414 = vpow2.f32 %v1570_v20 }
 0xa40   :  { %2416 = vrcp.f32 %v1574_v21 }
 0xa42   :  { %v1583_v22 = vpop.permute.xlu0 %1582 }
 0xa43   :  { %2330 = vmatpush3.msra.mxu1 %v1583_v22 }
 0xa4c   :  { %v2415_v23 = vpop.eup %2414 }
 0xa4d   :  { %v2417_v24 = vpop.eup %2416  ;;  %v1575_v25 = vsel %vm161_vm2, %v2415_v23, 0.0 }
 0xa4e   :  { %1576 = vadd.xlane.f32.xlu1 %v1575_v25  ;;  %v1580_v26 = vmul.f32 %v2417_v24, %v2413_v16  ;;  %v2162_v24 = vld [vmem:[#allocation7 + $0x3] ss:$0 sm:$0xff] }
 0xa50   :  { %2332 = vmatmul.mubr.msk.f32.vlgmr.msra.gmra.mxu1 %vm161_vm2, %v1580_v26 }
 0xa5f   :  { %1658 = vrot.lane.b32.xlu1 %v2601_v11, %s2534_s12 }
 0xa63   :  { %1735 = vrot.lane.b32.xlu1 %v2568_v0, %s2530_s8  ;;  %v2156_v0 = vld [vmem:[#allocation7 + $0x1] ss:$0 sm:$0xff] }
 0xad7   :  { %v1577_v10 = vpop.xlane.xlu1 %1576 }
 0xad8   :  { %2418 = vrcp.f32 %v1577_v10 }
 0xadb   :  { %v1659_v27 = vpop.permute.xlu1 %1658 }
 0xadc   :  { %2335 = vmatpush3.msra.mxu0 %v1659_v27 }
 0xadd   :  { %2344 = vmatprep.subr.mxu0 %v63_v52 }
 0xadf   :  { %v1736_v28 = vpop.permute.xlu1 %1735 }
 0xae0   :  { %2339 = vmatprep.subr.mxu1 %v1736_v28 }
 0xae1   :  { %2340 = vmatpush3.msra.mxu1 %v1736_v28 }
 0xae5   :  { %v2419_v29 = vpop.eup %2418 }
 0xae6   :  { %v1581_v30 = vmul.f32 %v2419_v29, %v2415_v23 }
 0xae8   :  { %2337 = vmatmul.mubr.msk.f32.vlgmr.msra.gmra.mxu0 %vm161_vm2, %v1581_v30 }
 0xae9   :  { %2345 = vmatpush3.msra.mxu0 %v63_v52 }
 0xb10   :  { %v1654_v31 = vpop.f32.mrf.mxu1 }
 0xb11   :  { %2341 = vmatprep.mubr.msk.f32.mxu1 %vm161_vm2, %v1654_v31 }
 0xb12   :  { %v2333_v32 = vpop.f32.mrf.mxu1 }
 0xba8   :  { %v1730_v33 = vpop.f32.mrf.mxu0 }
 0xba9   :  { %2342 = vmatmul.mubr.msk.f32.vlgmr.msra.gmra.mxu1 %vm161_vm2, %v1730_v33 }
 0xbaa   :  { %v2338_v11 = vpop.f32.mrf.mxu0 }
 0xc69   :  { %v2343_v34 = vpop.f32.mrf.mxu1 }
 0xc6a   :  { %v1820_v35 = vadd.f32 %v2343_v34, %v1403_v13 }
 0xc6b   :  { %v1810_v1 = vpop.f32.mrf.mxu1 }
 0xc6c   :  { %v1826_v36 = vadd.f32 %v2156_v0, %v1820_v35  ;;  %v1819_v37 = vadd.f32 %v1810_v1, %v1402_v3 }
 0xc6e   :  { %v1825_v38 = vadd.f32 %v2156_v0, %v1819_v37  ;;  %v1828_v39 = vadd.f32 %v1826_v36, %v2586_v5 }
 0xc70   :  { %v1832_v40 = vsel %vm76_vm0, %v1828_v39, 0.0  ;;  %v1827_v41 = vadd.f32 %v1825_v38, %v2573_v2  ;;  %v62_v2 = vld [vmem:[#allocation5 + $0x28] sm:$0xff] }
 0xc71   :  { %1833 = vadd.xlane.f32.xlu1 %v1832_v40  ;;  %2346 = vmatprep.subr.mxu0 %v62_v2 }
 0xc72   :  { %v1829_v42 = vsel %vm76_vm0, %v1827_v41, 0.0  ;;  %2347 = vmatpush3.msra.mxu0 %v62_v2 }
 0xc73   :  { %1830 = vadd.xlane.f32.xlu0 %v1829_v42  ;;  %2348 = vmatprep.subr.mxu0 %v61_v53 }
 0xc74   :  { %2349 = vmatpush3.msra.mxu0 %v61_v53 }
 0xc75   :  { %2350 = vmatprep.subr.mxu0 %v60_v54 }
 0xc76   :  { %2351 = vmatpush3.msra.mxu0 %v60_v54 }
 0xc82   :  { %1969 = vrot.lane.b32.xlu1 %v63_v52, %s2524_s2 }
 0xc86   :  { %1965 = vrot.lane.b32.xlu1 %v61_v53, %s2524_s2 }
 0xc8a   :  { %1963 = vrot.lane.b32.xlu1 %v60_v54, %s2524_s2 }
 0xcfa   :  { %v1834_v43 = vpop.xlane.xlu1 %1833 }
 0xcfb   :  { %v1837_v44 = vmul.f32 0.03125, %v1834_v43 }
 0xcfc   :  { %v1831_v45 = vpop.xlane.xlu0 %1830 }
 0xcfd   :  { %v1836_v46 = vmul.f32 0.03125, %v1831_v45  ;;  %v1839_v47 = vsub.f32 %v1828_v39, %v1837_v44 }
 0xcfe   :  { %v1970_v55 = vpop.permute.xlu1 %1969 }
 0xcff   :  { %v1838_v48 = vsub.f32 %v1827_v41, %v1836_v46  ;;  %v1841_v51 = vmul.f32 %v1839_v47, %v1839_v47  ;;  %2355 = vmatprep.subr.msk.mxu1 %vm1971_vm3, %v1970_v55  ;;  %v2169_v46 = vld [vmem:[#allocation7 + $0x6] ss:$0 sm:$0xff] }
 0xd00   :  { %2356 = vmatpush3.xpose.msk.msra.mxu1 %vm1971_vm3, %v1970_v55 }
 0xd01   :  { %v1840_v49 = vmul.f32 %v1838_v48, %v1838_v48  ;;  %v1845_v5 = vsel %vm76_vm0, %v1841_v51, 0.0 }
 0xd02   :  { %v1966_v63 = vpop.permute.xlu1 %1965 }
 0xd03   :  { %v1842_v50 = vsel %vm76_vm0, %v1840_v49, 0.0 }
 0xd04   :  { %1843 = vadd.xlane.f32.xlu0 %v1842_v50 }
 0xd06   :  { %v1964_v17 = vpop.permute.xlu1 %1963 }
 0xd08   :  { %1846 = vadd.xlane.f32.xlu0 %v1845_v5 }
 0xd1e   :  { %1967 = vrot.lane.b32.xlu0 %v62_v2, %s2524_s2 }
 0xd8d   :  { %v1844_v56 = vpop.xlane.xlu0 %1843 }
 0xd8e   :  { %v1848_v57 = vmul.f32 0.03125, %v1844_v56 }
 0xd90   :  { %v1850_v58 = vadd.f32 1e-05, %v1848_v57 }
 0xd91   :  { %v1847_v59 = vpop.xlane.xlu0 %1846 }
 0xd92   :  { %2420 = vrsqrt.f32 %v1850_v58  ;;  %v1849_v60 = vmul.f32 0.03125, %v1847_v59 }
 0xd94   :  { %v1851_v61 = vadd.f32 1e-05, %v1849_v60 }
 0xd95   :  { %v1968_v62 = vpop.permute.xlu0 %1967 }
 0xd96   :  { %2422 = vrsqrt.f32 %v1851_v61  ;;  %2357 = vmatprep.subr.msk.mxu1 %vm1971_vm3, %v1968_v62 }
 0xd97   :  { %2358 = vmatpush3.xpose.msk.msra.mxu1 %vm1971_vm3, %v1968_v62 }
 0xd98   :  { %2359 = vmatprep.subr.msk.mxu1 %vm1971_vm3, %v1966_v63 }
 0xd9b   :  { %2360 = vmatpush3.xpose.msk.msra.mxu1 %vm1971_vm3, %v1966_v63 }
 0xd9c   :  { %2361 = vmatprep.subr.msk.mxu1 %vm1971_vm3, %v1964_v17 }
 0xd9f   :  { %v2421_v7 = vpop.eup %2420  ;;  %2362 = vmatpush3.xpose.msk.msra.mxu1 %vm1971_vm3, %v1964_v17 }
 0xda0   :  { %v1854_v9 = vmul.f32 %v2421_v7, %v1838_v48  ;;  %v2170_v48 = vld [vmem:[#allocation7 + $0x7] ss:$0 sm:$0xff] }
 0xda2   :  { %v1860_v13 = vmul.f32 %v2157_v8, %v1854_v9 }
 0xda3   :  { %v2423_v14 = vpop.eup %2422 }
 0xda4   :  { %v1855_v3 = vmul.f32 %v2423_v14, %v1839_v47  ;;  %v1866_v4 = vadd.f32 %v2158_v12, %v1860_v13 }
 0xda6   :  { %v1861_v15 = vmul.f32 %v2157_v8, %v1855_v3  ;;  %2352 = vmatprep.mubr.msk.f32.mxu0 %vm76_vm0, %v1866_v4 }
 0xda8   :  { %v1867_v16 = vadd.f32 %v2158_v12, %v1861_v15 }
 0xdaa   :  { %2353 = vmatmul.mubr.msk.f32.vlgmr.msra.gmra.mxu0 %vm76_vm0, %v1867_v16 }
 0xe6a   :  { %v2354_v18 = vpop.f32.mrf.mxu0 }
 0xe6b   :  { %v1950_v19 = vadd.f32 %v2354_v18, %v2159_v6 }
 0xe6c   :  { %v1944_v20 = vpop.f32.mrf.mxu0 }
 0xe6d   :  { %v1945_v21 = vadd.f32 %v2159_v6, %v1944_v20  ;;  %v1954_v23 = vmax.f32 %v1950_v19, 0.0 }
 0xe6f   :  { %v1953_v22 = vmax.f32 %v1945_v21, 0.0 }
 0xe71   :  { %2363 = vmatprep.mubr.msk.f32.mxu1 %vm1971_vm3, %v1953_v22 }
 0xe72   :  { %2364 = vmatmul.mubr.msk.f32.vlgmr.msra.gmra.mxu1 %vm1971_vm3, %v1954_v23 }
 0xf32   :  { %v2365_v25 = vpop.f32.mrf.mxu1 }
 0xf33   :  { %v2058_v26 = vadd.f32 %v2365_v25, %v2162_v24 }
 0xf34   :  { %v2052_v10 = vpop.f32.mrf.mxu1 }
 0xf35   :  { %v2053_v27 = vadd.f32 %v2162_v24, %v2052_v10  ;;  %v2062_v28 = vadd.f32 %v2058_v26, %v1867_v16 }
 0xf37   :  { %v2066_v29 = vsel %vm76_vm0, %v2062_v28, 0.0  ;;  %v2061_v30 = vadd.f32 %v2053_v27, %v1866_v4 }
 0xf38   :  { %2067 = vadd.xlane.f32.xlu1 %v2066_v29 }
 0xf39   :  { %v2063_v31 = vsel %vm76_vm0, %v2061_v30, 0.0 }
 0xf3a   :  { %2064 = vadd.xlane.f32.xlu0 %v2063_v31 }
 0xfc1   :  { %v2068_v32 = vpop.xlane.xlu1 %2067 }
 0xfc2   :  { %v2070_v33 = vmul.f32 0.03125, %v2068_v32 }
 0xfc3   :  { %v2065_v11 = vpop.xlane.xlu0 %2064 }
 0xfc4   :  { %v2069_v0 = vmul.f32 0.03125, %v2065_v11  ;;  %v2072_v34 = vsub.f32 %v2062_v28, %v2070_v33 }
 0xfc6   :  { %v2071_v35 = vsub.f32 %v2061_v30, %v2069_v0  ;;  %v2074_v37 = vmul.f32 %v2072_v34, %v2072_v34 }
 0xfc8   :  { %v2073_v1 = vmul.f32 %v2071_v35, %v2071_v35  ;;  %v2078_v38 = vsel %vm76_vm0, %v2074_v37, 0.0 }
 0xfca   :  { %v2075_v36 = vsel %vm76_vm0, %v2073_v1, 0.0 }
 0xfcb   :  { %2076 = vadd.xlane.f32.xlu0 %v2075_v36 }
 0xfcf   :  { %2079 = vadd.xlane.f32.xlu0 %v2078_v38 }
0x1054   :  { %v2077_v39 = vpop.xlane.xlu0 %2076 }
0x1055   :  { %v2081_v40 = vmul.f32 0.03125, %v2077_v39 }
0x1057   :  { %v2083_v41 = vadd.f32 1e-05, %v2081_v40 }
0x1058   :  { %v2080_v42 = vpop.xlane.xlu0 %2079 }
0x1059   :  { %2424 = vrsqrt.f32 %v2083_v41  ;;  %v2082_v43 = vmul.f32 0.03125, %v2080_v42 }
0x105b   :  { %v2084_v44 = vadd.f32 1e-05, %v2082_v43 }
0x105d   :  { %2426 = vrsqrt.f32 %v2084_v44 }
0x1066   :  { %v2425_v45 = vpop.eup %2424 }
0x1067   :  { %v2087_v47 = vmul.f32 %v2425_v45, %v2071_v35 }
0x1069   :  { %v2093_v49 = vmul.f32 %v2169_v46, %v2087_v47 }
0x106a   :  { %v2427_v50 = vpop.eup %2426 }
0x106b   :  { %v2088_v51 = vmul.f32 %v2427_v50, %v2072_v34  ;;  %v2099_v5 = vadd.f32 %v2170_v48, %v2093_v49 }
0x106d   :  { %v2094_v52 = vmul.f32 %v2169_v46, %v2088_v51  ;;  %2101 = vst.msk [vmem:[#allocation8] sm:$0xff] %vm76_vm0, %v2099_v5 }
0x106f   :  { %v2100_v2 = vadd.f32 %v2170_v48, %v2094_v52 }
0x1071   :  { %2102 = vst.msk [vmem:[#allocation8 + $0x8] sm:$0xff] %vm76_vm0, %v2100_v2 }
0x1072   :  { %2499 = shalt.err (!%p2496_p5)
}
0x1073   :  { %2114 = dma.vmem_to_hbm [thread:$0]  %s2109_s14, 256, %s2774_s3, [#allocation4], %s2518_s22, %s2518_s22, %s2519_s23  }
0x1074   :  { %2512 = dma.done.wait [#allocation4], 256  }
0x1075   :  { %2513 = vsyncadd [#allocation4], 4294967040 }
0x1076   :  { %2118 = vsyncpa [#allocation3], 1 }
0x1077   :  { %2119 = vsyncpa [#allocation6], 1 }
0x1078   :  { %2120 = vsyncpa [#allocation4], 1 }

</bundles_post_ra>
